<compile_context>
chip_gen: v7x
topology: tpu7x:2x2x1
jax: 0.10.0
libtpu: 0.0.40
codegen_flags: <defaults>
</compile_context>

<pallas_src>
import jax
import jax.numpy as jnp
from jax.experimental import pallas as pl
from jax.experimental.pallas import tpu as pltpu

# ---------------- problem sizes (small, deterministic) ----------------
B = 2          # batch
N = 8          # sequence length
DIM = 32       # embedding dim
HEADS = 4
DIM_HEAD = 8
INNER = HEADS * DIM_HEAD   # 32
EPS = 1e-5
SCALE = DIM_HEAD ** -0.5


def prenorm_attn_kernel(x_ref, prm_ref, wqkv_ref, wo_ref, o_ref):
    x = x_ref[...]                                   # (B*N, DIM) float32
    prm = prm_ref[...]                               # (3, DIM)   float32
    gamma = prm[0:1, :]
    beta = prm[1:2, :]
    b_out = prm[2:3, :]

    # ---- LayerNorm over last dim (f32 elementwise) ----
    mean = jnp.mean(x, axis=-1, keepdims=True)
    var = jnp.mean(jnp.square(x - mean), axis=-1, keepdims=True)
    xn = (x - mean) * jax.lax.rsqrt(var + EPS) * gamma + beta   # (B*N, DIM)

    # ---- fused QKV projection: one MXU push, bf16 operands, f32 accumulate ----
    qkv = jnp.dot(xn.astype(jnp.bfloat16), wqkv_ref[...],
                  preferred_element_type=jnp.float32)           # (B*N, 3*INNER) f32
    # Single hoisted bf16 cast that feeds all attention matmuls.
    # (16 -> (2, 8) row split is exactly at the f32 sublane-tile boundary.)
    qkv = qkv.reshape(B, N, 3 * INNER).astype(jnp.bfloat16)     # (B, N, 3*INNER)

    # ---- gather q/k/v into a single batched (B*HEADS, N, DIM_HEAD) operand ----
    # Only lane slices + major-dim stack + leading-dim merge (no minor-dim
    # transposes), so the relayout cost is one stack per tensor.
    def gather(base):
        parts = [qkv[:, :, base + h * DIM_HEAD: base + (h + 1) * DIM_HEAD]
                 for h in range(HEADS)]                         # each (B, N, DIM_HEAD)
        return jnp.stack(parts, axis=1).reshape(B * HEADS, N, DIM_HEAD)

    q_g = gather(0)
    k_g = gather(INNER)
    v_g = gather(2 * INNER)

    # ---- batched attention: 2 dot_generals for ALL (batch, head) pairs ----
    s = jax.lax.dot_general(q_g, k_g, (((2,), (2,)), ((0,), (0,))),
                            preferred_element_type=jnp.float32) * SCALE  # (G, N, N)
    s = s - jnp.max(s, axis=-1, keepdims=True)
    p = jnp.exp(s)
    p = p * pl.reciprocal(jnp.sum(p, axis=-1, keepdims=True), approx=True)
    o_g = jax.lax.dot_general(p.astype(jnp.bfloat16), v_g,
                              (((2,), (1,)), ((0,), (0,))),
                              preferred_element_type=jnp.float32)        # (G, N, DIM_HEAD)

    # ---- re-interleave heads into (B*N, INNER) in registers (no VMEM scratch) ----
    o4 = o_g.reshape(B, HEADS, N, DIM_HEAD)
    attn = jnp.concatenate(
        [o4[:, h].reshape(B * N, DIM_HEAD) for h in range(HEADS)], axis=-1)  # (B*N, INNER)

    # ---- output projection + bias + residual (one MXU push) ----
    out = jnp.dot(attn.astype(jnp.bfloat16), wo_ref[...],
                  preferred_element_type=jnp.float32) + b_out   # (B*N, DIM)
    o_ref[...] = (out + x).astype(o_ref.dtype)


def pack_params(gamma, beta, wq, wk, wv, wo, bo):
    """One-time init-side packing: keep concat/casts OUT of the per-call path."""
    params = jnp.concatenate([gamma, beta, bo], axis=0)                    # (3, DIM) f32
    w_qkv = jnp.concatenate([wq, wk, wv], axis=1).astype(jnp.bfloat16)     # (DIM, 3*INNER)
    w_o = wo.astype(jnp.bfloat16)                                          # (INNER, DIM)
    return params, w_qkv, w_o


@jax.jit
def prenorm_attention(x, params, w_qkv, w_o):
    x2d = x.reshape(B * N, DIM)   # metadata-only under jit
    out2d = pl.pallas_call(
        prenorm_attn_kernel,
        out_shape=jax.ShapeDtypeStruct((B * N, DIM), jnp.float32),
        grid_spec=pltpu.PrefetchScalarGridSpec(
            num_scalar_prefetch=0,
            grid=(1,),
            in_specs=[
                pl.BlockSpec((B * N, DIM), lambda i: (0, 0)),       # x rows
                pl.BlockSpec((3, DIM), lambda i: (0, 0)),           # gamma/beta/bo
                pl.BlockSpec((DIM, 3 * INNER), lambda i: (0, 0)),   # fused Wqkv (bf16)
                pl.BlockSpec((INNER, DIM), lambda i: (0, 0)),       # Wo (bf16)
            ],
            out_specs=pl.BlockSpec((B * N, DIM), lambda i: (0, 0)),
        ),
        compiler_params=pltpu.CompilerParams(
            dimension_semantics=("arbitrary",)),
    )(x2d, params, w_qkv, w_o)
    return out2d.reshape(B, N, DIM)


def reference(x, gamma, beta, wq, wk, wv, wo, bo):
    mean = jnp.mean(x, axis=-1, keepdims=True)
    var = jnp.mean(jnp.square(x - mean), axis=-1, keepdims=True)
    xn = (x - mean) / jnp.sqrt(var + EPS) * gamma[0] + beta[0]
    q = xn @ wq
    k = xn @ wk
    v = xn @ wv
    reshape_h = lambda t: t.reshape(B, N, HEADS, DIM_HEAD).transpose(0, 2, 1, 3)
    qh, kh, vh = reshape_h(q), reshape_h(k), reshape_h(v)
    s = jnp.einsum("bhid,bhjd->bhij", qh, kh) * SCALE
    p = jax.nn.softmax(s, axis=-1)
    o = jnp.einsum("bhij,bhjd->bhid", p, vh).transpose(0, 2, 1, 3).reshape(B, N, INNER)
    return o @ wo + bo[0] + x


if __name__ == "__main__":
    key = jax.random.PRNGKey(0)
    kx, kg, kb, kq, kk, kv, ko, kbo = jax.random.split(key, 8)

    x = jax.random.normal(kx, (B, N, DIM), dtype=jnp.float32)
    # LayerNorm params (init like nn.LayerNorm but perturbed deterministically)
    gamma = jnp.ones((1, DIM), jnp.float32) + 0.1 * jax.random.normal(kg, (1, DIM))
    beta = 0.1 * jax.random.normal(kb, (1, DIM), dtype=jnp.float32)
    # Attention params
    wq = 0.1 * jax.random.normal(kq, (DIM, INNER), dtype=jnp.float32)
    wk = 0.1 * jax.random.normal(kk, (DIM, INNER), dtype=jnp.float32)
    wv = 0.1 * jax.random.normal(kv, (DIM, INNER), dtype=jnp.float32)
    wo = 0.1 * jax.random.normal(ko, (INNER, DIM), dtype=jnp.float32)
    bo = 0.1 * jax.random.normal(kbo, (1, DIM), dtype=jnp.float32)

    # One-time packing at "model init" (not in the jitted per-call path).
    params, w_qkv, w_o = pack_params(gamma, beta, wq, wk, wv, wo, bo)

    out = prenorm_attention(x, params, w_qkv, w_o)
    out = jax.block_until_ready(out)

    ref = reference(x, gamma, beta, wq, wk, wv, wo, bo)
    # bf16 MXU operands (~3 decimal digits) + approx EUP reciprocal (~2^-12 rel).
    assert jnp.allclose(out, ref, atol=2e-2, rtol=2e-2), "mismatch vs JAX reference"
    print("KERNEL_OK")
</pallas_src>

<mosaic_0001>
module attributes {stable_mosaic.version = 11 : i64} {
  func.func @prenorm_attn_kernel(%arg0: i32, %arg1: memref<16x32xf32, #tpu.memory_space<vmem>>, %arg2: memref<3x32xf32, #tpu.memory_space<vmem>>, %arg3: memref<32x96xbf16, #tpu.memory_space<vmem>>, %arg4: memref<32x32xbf16, #tpu.memory_space<vmem>>, %arg5: memref<16x32xf32, #tpu.memory_space<vmem>>) attributes {dimension_semantics = [#tpu.dimension_semantics<arbitrary>], iteration_bounds = array<i64: 1>, scalar_prefetch = 0 : i64, scratch_operands = 0 : i64, tpu.core_type = #tpu.core_type<tc>, window_params = [{pipeline_mode = #tpu.pipeline_mode<synchronous>, transform_indices = @transform_0, window_bounds = array<i64: 16, 32>}, {pipeline_mode = #tpu.pipeline_mode<synchronous>, transform_indices = @transform_1, window_bounds = array<i64: 3, 32>}, {pipeline_mode = #tpu.pipeline_mode<synchronous>, transform_indices = @transform_2, window_bounds = array<i64: 32, 96>}, {pipeline_mode = #tpu.pipeline_mode<synchronous>, transform_indices = @transform_3, window_bounds = array<i64: 32, 32>}, {pipeline_mode = #tpu.pipeline_mode<synchronous>, transform_indices = @transform_4, window_bounds = array<i64: 16, 32>}]} {
    %c0 = arith.constant 0 : index
    %c0_0 = arith.constant 0 : index
    %0 = vector.load %arg1[%c0, %c0_0] : memref<16x32xf32, #tpu.memory_space<vmem>>, vector<16x32xf32>
    %c0_1 = arith.constant 0 : index
    %c0_2 = arith.constant 0 : index
    %1 = vector.load %arg2[%c0_1, %c0_2] : memref<3x32xf32, #tpu.memory_space<vmem>>, vector<3x32xf32>
    %2 = vector.extract_strided_slice %1 {offsets = [0, 0], sizes = [1, 32], strides = [1, 1]} : vector<3x32xf32> to vector<1x32xf32>
    %3 = vector.extract_strided_slice %1 {offsets = [1, 0], sizes = [1, 32], strides = [1, 1]} : vector<3x32xf32> to vector<1x32xf32>
    %4 = vector.extract_strided_slice %1 {offsets = [2, 0], sizes = [1, 32], strides = [1, 1]} : vector<3x32xf32> to vector<1x32xf32>
    %cst = arith.constant dense<0.000000e+00> : vector<16xf32>
    %5 = vector.multi_reduction <add>, %0, %cst [1] : vector<16x32xf32> to vector<16xf32>
    %6 = vector.shape_cast %5 : vector<16xf32> to vector<16x1xf32>
    %cst_3 = arith.constant 3.200000e+01 : f32
    %7 = vector.broadcast %cst_3 : f32 to vector<16x1xf32>
    %8 = arith.divf %6, %7 : vector<16x1xf32>
    %9 = vector.broadcast %8 : vector<16x1xf32> to vector<16x32xf32>
    %10 = arith.subf %0, %9 : vector<16x32xf32>
    %11 = arith.mulf %10, %10 : vector<16x32xf32>
    %cst_4 = arith.constant dense<0.000000e+00> : vector<16xf32>
    %12 = vector.multi_reduction <add>, %11, %cst_4 [1] : vector<16x32xf32> to vector<16xf32>
    %13 = vector.shape_cast %12 : vector<16xf32> to vector<16x1xf32>
    %cst_5 = arith.constant 3.200000e+01 : f32
    %14 = vector.broadcast %cst_5 : f32 to vector<16x1xf32>
    %15 = arith.divf %13, %14 : vector<16x1xf32>
    %16 = vector.broadcast %8 : vector<16x1xf32> to vector<16x32xf32>
    %17 = arith.subf %0, %16 : vector<16x32xf32>
    %cst_6 = arith.constant 9.99999974E-6 : f32
    %18 = vector.broadcast %cst_6 : f32 to vector<16x1xf32>
    %19 = arith.addf %15, %18 : vector<16x1xf32>
    %20 = math.rsqrt %19 : vector<16x1xf32>
    %21 = vector.broadcast %20 : vector<16x1xf32> to vector<16x32xf32>
    %22 = arith.mulf %17, %21 : vector<16x32xf32>
    %23 = vector.broadcast %2 : vector<1x32xf32> to vector<16x32xf32>
    %24 = arith.mulf %22, %23 : vector<16x32xf32>
    %25 = vector.broadcast %3 : vector<1x32xf32> to vector<16x32xf32>
    %26 = arith.addf %24, %25 : vector<16x32xf32>
    %27 = arith.truncf %26 : vector<16x32xf32> to vector<16x32xbf16>
    %c0_7 = arith.constant 0 : index
    %c0_8 = arith.constant 0 : index
    %28 = vector.load %arg3[%c0_7, %c0_8] : memref<32x96xbf16, #tpu.memory_space<vmem>>, vector<32x96xbf16>
    %cst_9 = arith.constant dense<0.000000e+00> : vector<16x96xf32>
    %29 = tpu.matmul %27, %28, %cst_9 {dimension_numbers = #tpu.dot_dimension_numbers<[1], [0], [0], [1], [0, 0, 1, 1], [], []>} : vector<16x32xbf16>, vector<32x96xbf16>, vector<16x96xf32> -> vector<16x96xf32>
    %30 = vector.shape_cast %29 : vector<16x96xf32> to vector<2x8x96xf32>
    %31 = arith.truncf %30 : vector<2x8x96xf32> to vector<2x8x96xbf16>
    %32 = vector.extract_strided_slice %31 {offsets = [0, 0, 0], sizes = [2, 8, 8], strides = [1, 1, 1]} : vector<2x8x96xbf16> to vector<2x8x8xbf16>
    %33 = vector.extract_strided_slice %31 {offsets = [0, 0, 8], sizes = [2, 8, 8], strides = [1, 1, 1]} : vector<2x8x96xbf16> to vector<2x8x8xbf16>
    %34 = vector.extract_strided_slice %31 {offsets = [0, 0, 16], sizes = [2, 8, 8], strides = [1, 1, 1]} : vector<2x8x96xbf16> to vector<2x8x8xbf16>
    %35 = vector.extract_strided_slice %31 {offsets = [0, 0, 24], sizes = [2, 8, 8], strides = [1, 1, 1]} : vector<2x8x96xbf16> to vector<2x8x8xbf16>
    %36 = vector.shape_cast %32 : vector<2x8x8xbf16> to vector<2x1x8x8xbf16>
    %37 = vector.shape_cast %33 : vector<2x8x8xbf16> to vector<2x1x8x8xbf16>
    %38 = vector.shape_cast %34 : vector<2x8x8xbf16> to vector<2x1x8x8xbf16>
    %39 = vector.shape_cast %35 : vector<2x8x8xbf16> to vector<2x1x8x8xbf16>
    %40 = tpu.concatenate %36, %37, %38, %39 in 1 : vector<2x1x8x8xbf16>, vector<2x1x8x8xbf16>, vector<2x1x8x8xbf16>, vector<2x1x8x8xbf16> -> vector<2x4x8x8xbf16>
    %41 = vector.shape_cast %40 : vector<2x4x8x8xbf16> to vector<8x8x8xbf16>
    %42 = vector.extract_strided_slice %31 {offsets = [0, 0, 32], sizes = [2, 8, 8], strides = [1, 1, 1]} : vector<2x8x96xbf16> to vector<2x8x8xbf16>
    %43 = vector.extract_strided_slice %31 {offsets = [0, 0, 40], sizes = [2, 8, 8], strides = [1, 1, 1]} : vector<2x8x96xbf16> to vector<2x8x8xbf16>
    %44 = vector.extract_strided_slice %31 {offsets = [0, 0, 48], sizes = [2, 8, 8], strides = [1, 1, 1]} : vector<2x8x96xbf16> to vector<2x8x8xbf16>
    %45 = vector.extract_strided_slice %31 {offsets = [0, 0, 56], sizes = [2, 8, 8], strides = [1, 1, 1]} : vector<2x8x96xbf16> to vector<2x8x8xbf16>
    %46 = vector.shape_cast %42 : vector<2x8x8xbf16> to vector<2x1x8x8xbf16>
    %47 = vector.shape_cast %43 : vector<2x8x8xbf16> to vector<2x1x8x8xbf16>
    %48 = vector.shape_cast %44 : vector<2x8x8xbf16> to vector<2x1x8x8xbf16>
    %49 = vector.shape_cast %45 : vector<2x8x8xbf16> to vector<2x1x8x8xbf16>
    %50 = tpu.concatenate %46, %47, %48, %49 in 1 : vector<2x1x8x8xbf16>, vector<2x1x8x8xbf16>, vector<2x1x8x8xbf16>, vector<2x1x8x8xbf16> -> vector<2x4x8x8xbf16>
    %51 = vector.shape_cast %50 : vector<2x4x8x8xbf16> to vector<8x8x8xbf16>
    %52 = vector.extract_strided_slice %31 {offsets = [0, 0, 64], sizes = [2, 8, 8], strides = [1, 1, 1]} : vector<2x8x96xbf16> to vector<2x8x8xbf16>
    %53 = vector.extract_strided_slice %31 {offsets = [0, 0, 72], sizes = [2, 8, 8], strides = [1, 1, 1]} : vector<2x8x96xbf16> to vector<2x8x8xbf16>
    %54 = vector.extract_strided_slice %31 {offsets = [0, 0, 80], sizes = [2, 8, 8], strides = [1, 1, 1]} : vector<2x8x96xbf16> to vector<2x8x8xbf16>
    %55 = vector.extract_strided_slice %31 {offsets = [0, 0, 88], sizes = [2, 8, 8], strides = [1, 1, 1]} : vector<2x8x96xbf16> to vector<2x8x8xbf16>
    %56 = vector.shape_cast %52 : vector<2x8x8xbf16> to vector<2x1x8x8xbf16>
    %57 = vector.shape_cast %53 : vector<2x8x8xbf16> to vector<2x1x8x8xbf16>
    %58 = vector.shape_cast %54 : vector<2x8x8xbf16> to vector<2x1x8x8xbf16>
    %59 = vector.shape_cast %55 : vector<2x8x8xbf16> to vector<2x1x8x8xbf16>
    %60 = tpu.concatenate %56, %57, %58, %59 in 1 : vector<2x1x8x8xbf16>, vector<2x1x8x8xbf16>, vector<2x1x8x8xbf16>, vector<2x1x8x8xbf16> -> vector<2x4x8x8xbf16>
    %61 = vector.shape_cast %60 : vector<2x4x8x8xbf16> to vector<8x8x8xbf16>
    %cst_10 = arith.constant dense<0.000000e+00> : vector<8x8x8xf32>
    %62 = tpu.matmul %41, %51, %cst_10 {dimension_numbers = #tpu.dot_dimension_numbers<[2], [2], [1], [1], [0, 0, 0, 1, 1, 1], [0], [0]>} : vector<8x8x8xbf16>, vector<8x8x8xbf16>, vector<8x8x8xf32> -> vector<8x8x8xf32>
    %cst_11 = arith.constant 0.353553385 : f32
    %63 = vector.broadcast %cst_11 : f32 to vector<8x8x8xf32>
    %64 = arith.mulf %62, %63 : vector<8x8x8xf32>
    %cst_12 = arith.constant dense<0xFF800000> : vector<8x8xf32>
    %65 = vector.multi_reduction <maximumf>, %64, %cst_12 [2] : vector<8x8x8xf32> to vector<8x8xf32>
    %66 = vector.shape_cast %65 : vector<8x8xf32> to vector<8x8x1xf32>
    %67 = vector.broadcast %66 : vector<8x8x1xf32> to vector<8x8x8xf32>
    %68 = arith.subf %64, %67 : vector<8x8x8xf32>
    %69 = math.exp %68 : vector<8x8x8xf32>
    %cst_13 = arith.constant dense<0.000000e+00> : vector<8x8xf32>
    %70 = vector.multi_reduction <add>, %69, %cst_13 [2] : vector<8x8x8xf32> to vector<8x8xf32>
    %71 = vector.shape_cast %70 : vector<8x8xf32> to vector<8x8x1xf32>
    %72 = tpu.reciprocal %71 {approx = true} : vector<8x8x1xf32> -> vector<8x8x1xf32>
    %73 = vector.broadcast %72 : vector<8x8x1xf32> to vector<8x8x8xf32>
    %74 = arith.mulf %69, %73 : vector<8x8x8xf32>
    %75 = arith.truncf %74 : vector<8x8x8xf32> to vector<8x8x8xbf16>
    %cst_14 = arith.constant dense<0.000000e+00> : vector<8x8x8xf32>
    %76 = tpu.matmul %75, %61, %cst_14 {dimension_numbers = #tpu.dot_dimension_numbers<[2], [1], [1], [2], [0, 0, 0, 1, 1, 2], [0], [0]>} : vector<8x8x8xbf16>, vector<8x8x8xbf16>, vector<8x8x8xf32> -> vector<8x8x8xf32>
    %77 = vector.shape_cast %76 : vector<8x8x8xf32> to vector<2x4x8x8xf32>
    %78 = vector.extract_strided_slice %77 {offsets = [0, 0, 0, 0], sizes = [2, 1, 8, 8], strides = [1, 1, 1, 1]} : vector<2x4x8x8xf32> to vector<2x1x8x8xf32>
    %79 = vector.shape_cast %78 : vector<2x1x8x8xf32> to vector<2x8x8xf32>
    %80 = vector.shape_cast %79 : vector<2x8x8xf32> to vector<16x8xf32>
    %81 = vector.extract_strided_slice %77 {offsets = [0, 1, 0, 0], sizes = [2, 1, 8, 8], strides = [1, 1, 1, 1]} : vector<2x4x8x8xf32> to vector<2x1x8x8xf32>
    %82 = vector.shape_cast %81 : vector<2x1x8x8xf32> to vector<2x8x8xf32>
    %83 = vector.shape_cast %82 : vector<2x8x8xf32> to vector<16x8xf32>
    %84 = vector.extract_strided_slice %77 {offsets = [0, 2, 0, 0], sizes = [2, 1, 8, 8], strides = [1, 1, 1, 1]} : vector<2x4x8x8xf32> to vector<2x1x8x8xf32>
    %85 = vector.shape_cast %84 : vector<2x1x8x8xf32> to vector<2x8x8xf32>
    %86 = vector.shape_cast %85 : vector<2x8x8xf32> to vector<16x8xf32>
    %87 = vector.extract_strided_slice %77 {offsets = [0, 3, 0, 0], sizes = [2, 1, 8, 8], strides = [1, 1, 1, 1]} : vector<2x4x8x8xf32> to vector<2x1x8x8xf32>
    %88 = vector.shape_cast %87 : vector<2x1x8x8xf32> to vector<2x8x8xf32>
    %89 = vector.shape_cast %88 : vector<2x8x8xf32> to vector<16x8xf32>
    %90 = tpu.concatenate %80, %83, %86, %89 in 1 : vector<16x8xf32>, vector<16x8xf32>, vector<16x8xf32>, vector<16x8xf32> -> vector<16x32xf32>
    %91 = arith.truncf %90 : vector<16x32xf32> to vector<16x32xbf16>
    %c0_15 = arith.constant 0 : index
    %c0_16 = arith.constant 0 : index
    %92 = vector.load %arg4[%c0_15, %c0_16] : memref<32x32xbf16, #tpu.memory_space<vmem>>, vector<32x32xbf16>
    %cst_17 = arith.constant dense<0.000000e+00> : vector<16x32xf32>
    %93 = tpu.matmul %91, %92, %cst_17 {dimension_numbers = #tpu.dot_dimension_numbers<[1], [0], [0], [1], [0, 0, 1, 1], [], []>} : vector<16x32xbf16>, vector<32x32xbf16>, vector<16x32xf32> -> vector<16x32xf32>
    %94 = vector.broadcast %4 : vector<1x32xf32> to vector<16x32xf32>
    %95 = arith.addf %93, %94 : vector<16x32xf32>
    %96 = arith.addf %95, %0 : vector<16x32xf32>
    %c0_18 = arith.constant 0 : index
    %c0_19 = arith.constant 0 : index
    %97 = vector.load %arg5[%c0_18, %c0_19] : memref<16x32xf32, #tpu.memory_space<vmem>>, vector<16x32xf32>
    tpu.vector_store %arg5[%c0_18, %c0_19], %96 {strides = array<i32>} : memref<16x32xf32, #tpu.memory_space<vmem>>, vector<16x32xf32>,
    return
  }
  func.func @transform_0(%arg0: i32) -> (i32, i32) {
    %c0_i32 = arith.constant 0 : i32
    %c0_i32_0 = arith.constant 0 : i32
    %c0_i32_1 = arith.constant 0 : i32
    return %c0_i32, %c0_i32_0 : i32, i32
  }
  func.func @transform_1(%arg0: i32) -> (i32, i32) {
    %c0_i32 = arith.constant 0 : i32
    %c0_i32_0 = arith.constant 0 : i32
    %c0_i32_1 = arith.constant 0 : i32
    return %c0_i32, %c0_i32_0 : i32, i32
  }
  func.func @transform_2(%arg0: i32) -> (i32, i32) {
    %c0_i32 = arith.constant 0 : i32
    %c0_i32_0 = arith.constant 0 : i32
    %c0_i32_1 = arith.constant 0 : i32
    return %c0_i32, %c0_i32_0 : i32, i32
  }
  func.func @transform_3(%arg0: i32) -> (i32, i32) {
    %c0_i32 = arith.constant 0 : i32
    %c0_i32_0 = arith.constant 0 : i32
    %c0_i32_1 = arith.constant 0 : i32
    return %c0_i32, %c0_i32_0 : i32, i32
  }
  func.func @transform_4(%arg0: i32) -> (i32, i32) {
    %c0_i32 = arith.constant 0 : i32
    %c0_i32_0 = arith.constant 0 : i32
    %c0_i32_1 = arith.constant 0 : i32
    return %c0_i32, %c0_i32_0 : i32, i32
  }
}

</mosaic_0001>

<bundles_post_ra>
// kernel: prenorm_attention.1
= control target key start
LH: loop header
LB: loop body
LE: loop exit
PB: predicated region body
PF: predicated region fallthrough
CT: control target
= control target key end

     0   :  { %9 = vsyncpa [#allocation3], 0  ;;  %s1859_s0 = inlined_call_operand.hbm [shape: f32[16,32], index: 0, kind: input, shape index: {}]   ;;  %s1860_s1 = inlined_call_operand.vmem [shape: f32[3,32], index: 1, kind: input, shape index: {}]   ;;  %s1861_s2 = inlined_call_operand.hbm [shape: bf16[32,96], index: 2, kind: input, shape index: {}]   ;;  %s1862_s3 = inlined_call_operand.hbm [shape: bf16[32,32], index: 3, kind: input, shape index: {}]   ;;  %s1863_s4 = inlined_call_operand.hbm [shape: f32[16,32], index: 4, kind: output, shape index: {}]  }
   0x1   :  { %10 = vsyncpa [#allocation6], 0 }
   0x2   :  { %11 = vsyncpa [#allocation4], 0  ;;  %s1510_s15 = smov [#allocation5]   ;;  %s1416_s19 = scalar_lea.hbm %s1861_s2, 256 }
   0x3   :  { %s31_s16 = sshll.u32 %s1510_s15, 4  ;;  %p1417_p0 = scmp.ne.s32.totalorder %s1861_s2, %s1416_s19  ;;  %s32_s16 = int_to_ptr.vmem [resolvable:$true] %s31_s16 }
   0x4   :  { %p1420_p1 = scmp.lt.u32.totalorder %s1416_s19, %s1861_s2 }
   0x6   :  { %p1422_p2 = pnand %p1420_p1, %p1417_p0 }
   0x8   :  { %1425 = shalt.err (!%p1422_p2)
}
   0x9   :  { %s1426_s24 = scalar_lea.vmem %s32_s16, 256  ;;  %p1431_p4 = scmp.lt.s32.totalorder %s32_s16, %s32_s16 }
   0xa   :  { %p1427_p3 = scmp.ne.s32.totalorder %s32_s16, %s1426_s24  ;;  %p1432_p5 = scmp.lt.s32.totalorder %s1426_s24, %s1426_s24 }
   0xc   :  { %p1433_p6 = por %p1432_p5, %p1431_p4 }
   0xe   :  { %p1434_p7 = pnand %p1433_p6, %p1427_p3 }
  0x10   :  { %1437 = shalt.err (!%p1434_p7)
}
  0x11   :  { %s1511_s25 = smov 64   ;;  %s1512_s26 = smov 4  }
  0x12   :  { %37 = dma.hbm_to_vmem [thread:$0]  %s1861_s2, 256, %s32_s16, [#allocation6], %s1511_s25, %s1511_s25, %s1512_s26  }
  0x13   :  { %s1513_s29 = smov [#allocation2]   ;;  %s1438_s7 = scalar_lea.hbm %s1859_s0, 256 }
  0x14   :  { %s17_s30 = sshll.u32 %s1513_s29, 4  ;;  %p1439_p8 = scmp.ne.s32.totalorder %s1859_s0, %s1438_s7  ;;  %s18_s30 = int_to_ptr.vmem [resolvable:$true] %s17_s30 }
  0x15   :  { %p1442_p9 = scmp.lt.u32.totalorder %s1438_s7, %s1859_s0 }
  0x17   :  { %p1444_p10 = pnand %p1442_p9, %p1439_p8 }
  0x19   :  { %1447 = shalt.err (!%p1444_p10)
}
  0x1a   :  { %s1448_s12 = scalar_lea.vmem %s18_s30, 256  ;;  %p1453_p12 = scmp.lt.s32.totalorder %s18_s30, %s18_s30 }
  0x1b   :  { %p1449_p11 = scmp.ne.s32.totalorder %s18_s30, %s1448_s12  ;;  %p1454_p13 = scmp.lt.s32.totalorder %s1448_s12, %s1448_s12 }
  0x1d   :  { %p1455_p0 = por %p1454_p13, %p1453_p12 }
  0x1f   :  { %p1456_p1 = pnand %p1455_p0, %p1449_p11 }
  0x21   :  { %1459 = shalt.err (!%p1456_p1)
}
  0x22   :  { %s1514_s2 = smov 128   ;;  %s1515_s13 = smov 8  }
  0x23   :  { %23 = dma.hbm_to_vmem [thread:$0]  %s1859_s0, 256, %s18_s30, [#allocation3], %s1514_s2, %s1514_s2, %s1515_s13  }
  0x24   :  { %s1516_s16 = smov [#allocation7]   ;;  %s1460_s20 = scalar_lea.hbm %s1862_s3, 256 }
  0x25   :  { %s43_s17 = sshll.u32 %s1516_s16, 4  ;;  %p1461_p2 = scmp.ne.s32.totalorder %s1862_s3, %s1460_s20  ;;  %s44_s17 = int_to_ptr.vmem [resolvable:$true] %s43_s17 }
  0x26   :  { %p1464_p3 = scmp.lt.u32.totalorder %s1460_s20, %s1862_s3 }
  0x28   :  { %p1466_p4 = pnand %p1464_p3, %p1461_p2 }
  0x2a   :  { %1469 = shalt.err (!%p1466_p4)
}
  0x2b   :  { %s1470_s27 = scalar_lea.vmem %s44_s17, 256  ;;  %p1475_p6 = scmp.lt.s32.totalorder %s44_s17, %s44_s17 }
  0x2c   :  { %p1471_p5 = scmp.ne.s32.totalorder %s44_s17, %s1470_s27  ;;  %p1476_p7 = scmp.lt.s32.totalorder %s1470_s27, %s1470_s27 }
  0x2e   :  { %p1477_p8 = por %p1476_p7, %p1475_p6 }
  0x30   :  { %p1478_p9 = pnand %p1477_p8, %p1471_p5 }
  0x32   :  { %1481 = shalt.err (!%p1478_p9)
}
  0x33   :  { %49 = dma.hbm_to_vmem [thread:$0]  %s1862_s3, 256, %s44_s17, [#allocation6], %s1511_s25, %s1511_s25, %s1512_s26  }
  0x34   :  { %1504 = dma.done.wait [#allocation3], 256  }
  0x35   :  { %1505 = vsyncadd [#allocation3], 4294967040 }
  0x36   :  { %1506 = dma.done.wait [#allocation6], 512  }
  0x37   :  { %1507 = vsyncadd [#allocation6], 4294966784  ;;  %vm63_vm0 = vcmask 261120   ;;  %v1596_v0 = vld [vmem:[#allocation2] sm:$0xff]  ;;  %v1598_v1 = vld [vmem:[#allocation2 + $0x8] sm:$0xff]  ;;  %v1517_v15 = vmov 0.0   ;;  %v91_v21 = vlaneseq }
  0x38   :  { %v64_v2 = vsel %vm63_vm0, %v1596_v0, 0.0  ;;  %v67_v3 = vsel %vm63_vm0, %v1598_v1, 0.0  ;;  %v1376_v14 = vld [vmem:[#allocation5] sm:$0xff]   ;;  %1233 = vmatprep.subr.bf16.mxu0 %v1517_v15  ;;  %1241 = vmatprep.subr.bf16.mxu1 %v1517_v15  ;;  %v1377_v16 = vld [vmem:[#allocation5 + $0x8] sm:$0xff]   ;;  %vm1518_vm1 = vmmov 0   ;;  %s1520_s29 = smov 120  }
  0x39   :  { %65 = vadd.xlane.f32.xlu0 %v64_v2  ;;  %1234 = vmatpush3.bf16.msra.mxu0 %v1376_v14  ;;  %v1616_v24 = vshrl.u32 %v91_v21, 7  ;;  %v1622_v26 = vld [vmem:[%s1860_s1] sm:$0x7]  ;;  %s1519_s1 = smov 112   ;;  %s1521_s30 = smov 104   ;;  %vm182_vm2 = vcmask 64512  }
  0x3a   :  { %1237 = vmatprep.mubr.msk.bf16.mxu0 %vm1518_vm1, %v1517_v15  ;;  %1235 = vmatprep.subr.bf16.mxu0 %v1517_v15  ;;  %s1522_s5 = smov 96   ;;  %vm674_vm3 = vcmask 1043456   ;;  %s1524_s6 = smov 24   ;;  %vm1080_vm4 = vcmask 130048   ;;  %vm1083_vm5 = vcmask 195584  }
  0x3b   :  { %1243 = vmatprep.mubr.msk.bf16.mxu1 %vm1518_vm1, %v1517_v15  ;;  %v93_v25 = vsub.s32 0, %v1616_v24  ;;  %v99_v30 = vsub.s32 1, %v1616_v24  ;;  %s1525_s7 = smov [#allocation8]  }
  0x3c   :  { %s1160_s8 = sshll.u32 %s1525_s7, 4  ;;  %s1161_s8 = int_to_ptr.vmem [resolvable:$true] %s1160_s8 }
  0x3d   :  { %68 = vadd.xlane.f32.xlu0 %v67_v3  ;;  %1236 = vmatpush3.bf16.msra.mxu0 %v1377_v16  ;;  %v94_v29 = vrot.slane %v1622_v26, %v93_v25  ;;  %v100_v34 = vrot.slane %v1622_v26, %v99_v30  ;;  %s1482_s9 = scalar_lea.vmem %s1161_s8, 256  ;;  %p1487_p11 = scmp.lt.s32.totalorder %s1161_s8, %s1161_s8 }
  0x3e   :  { %1247 = vmatprep.subr.bf16.mxu0 %v1517_v15  ;;  %p1483_p10 = scmp.ne.s32.totalorder %s1161_s8, %s1482_s9  ;;  %p1488_p12 = scmp.lt.s32.totalorder %s1482_s9, %s1482_s9 }
  0x40   :  { %p1489_p13 = por %p1488_p12, %p1487_p11 }
  0x42   :  { %p1490_p0 = pnand %p1489_p13, %p1483_p10 }
  0xc6   :  { %v66_v4 = vpop.xlane.xlu0 %65 }
  0xc7   :  { %v71_v5 = vmul.f32 0.03125, %v66_v4 }
  0xc9   :  { %v73_v6 = vsub.f32 %v1596_v0, %v71_v5 }
  0xca   :  { %v69_v7 = vpop.xlane.xlu0 %68 }
  0xcb   :  { %v72_v8 = vmul.f32 0.03125, %v69_v7  ;;  %v75_v9 = vmul.f32 %v73_v6, %v73_v6 }
  0xcd   :  { %v74_v10 = vsub.f32 %v1598_v1, %v72_v8  ;;  %v77_v11 = vsel %vm63_vm0, %v75_v9, 0.0 }
  0xce   :  { %78 = vadd.xlane.f32.xlu1 %v77_v11 }
  0xcf   :  { %v76_v12 = vmul.f32 %v74_v10, %v74_v10 }
  0xd1   :  { %v80_v13 = vsel %vm63_vm0, %v76_v12, 0.0 }
  0xd2   :  { %81 = vadd.xlane.f32.xlu1 %v80_v13 }
 0x15b   :  { %v79_v17 = vpop.xlane.xlu1 %78 }
 0x15c   :  { %v83_v18 = vmul.f32 0.03125, %v79_v17 }
 0x15e   :  { %v85_v19 = vadd.f32 1e-05, %v83_v18 }
 0x15f   :  { %v82_v20 = vpop.xlane.xlu1 %81 }
 0x160   :  { %1380 = vrsqrt.f32 %v85_v19  ;;  %v84_v22 = vmul.f32 0.03125, %v82_v20 }
 0x162   :  { %v86_v23 = vadd.f32 1e-05, %v84_v22 }
 0x164   :  { %1382 = vrsqrt.f32 %v86_v23 }
 0x16a   :  { %v1381_v27 = vpop.eup %1380 }
 0x16b   :  { %v89_v28 = vmul.f32 %v1381_v27, %v73_v6 }
 0x16d   :  { %v95_v33 = vmul.f32 %v94_v29, %v89_v28 }
 0x16e   :  { %v1383_v31 = vpop.eup %1382 }
 0x16f   :  { %v90_v32 = vmul.f32 %v1383_v31, %v74_v10  ;;  %v101_v36 = vadd.f32 %v100_v34, %v95_v33 }
 0x171   :  { %v96_v35 = vmul.f32 %v94_v29, %v90_v32 }
 0x173   :  { %v102_v37 = vadd.f32 %v100_v34, %v96_v35 }
 0x175   :  { %v103_v38 = vpack.c.bf16 %v102_v37, %v101_v36 }
 0x177   :  { %1238 = vmatmul.mubr.msk.bf16.vlgmr.msra.gmra.mrb[0].mxu0 %vm63_vm0, %v103_v38 }
 0x178   :  { %1249 = vmatprep.mubr.msk.bf16.mxu0 %vm1518_vm1, %v1517_v15 }
 0x24a   :  { %v157_v39 = vpop.f32.mrb[0].mxu0 }
 0x24b   :  { %v1630_v40 = vpack.c.bf16 %v157_v39, %v157_v39  ;;  %v1239_v41 = vpop.f32.mrb[1].mxu0 }
 0x24c   :  { %v160_v42 = vpop.f32.mrb[2].mxu0 }
 0x24d   :  { %172 = vrot.lane.b32.xlu1 %v1630_v40, %s1519_s1  ;;  %168 = vrot.lane.b32.xlu0 %v1630_v40, %s1520_s29  ;;  %v1240_v43 = vpop.f32.mrb[3].mxu0  ;;  %v1634_v44 = vpack.c.bf16 %v160_v42, %v160_v42 }
 0x251   :  { %176 = vrot.lane.b32.xlu1 %v1630_v40, %s1521_s30  ;;  %174 = vrot.lane.b32.xlu0 %v1634_v44, %s1519_s1 }
 0x255   :  { %180 = vrot.lane.b32.xlu0 %v1630_v40, %s1522_s5  ;;  %170 = vrot.lane.b32.xlu1 %v1634_v44, %s1520_s29 }
 0x259   :  { %178 = vrot.lane.b32.xlu1 %v1634_v44, %s1521_s30 }
 0x2bf   :  { %v1641_v45 = vpop.permute.xlu1 %172  ;;  %v1643_v46 = vpop.permute.xlu0 %168 }
 0x2c0   :  { %277 = vrot.lane.b32.xlu0 %v1641_v45, %s1522_s5  ;;  %229 = vrot.lane.b32.xlu1 %v1643_v46, %s1522_s5 }
 0x2c3   :  { %v1647_v47 = vpop.permute.xlu1 %176  ;;  %v1649_v48 = vpop.permute.xlu0 %174 }
 0x2c4   :  { %373 = vrot.lane.b32.xlu0 %v1634_v44, %s1522_s5  ;;  %325 = vrot.lane.b32.xlu1 %v1647_v47, %s1522_s5 }
 0x2c7   :  { %v181_v49 = vpop.permute.xlu0 %180  ;;  %v1653_v50 = vpop.permute.xlu1 %170 }
 0x2c8   :  { %469 = vrot.lane.b32.xlu0 %v1649_v48, %s1522_s5  ;;  %421 = vrot.lane.b32.xlu1 %v1653_v50, %s1522_s5  ;;  %v187_v51 = vsel %vm182_vm2, %v181_v49, 0 }
 0x2c9   :  { %1242 = vmatpush3.bf16.xpose.msra.mxu1 %v187_v51 }
 0x2ca   :  { %1253 = vmatprep.subr.bf16.mxu1 %v1517_v15 }
 0x2cb   :  { %v1659_v52 = vpop.permute.xlu1 %178 }
 0x2cc   :  { %517 = vrot.lane.b32.xlu1 %v1659_v52, %s1522_s5 }
 0x2d0   :  { %1244 = vmatmul.mubr.msk.bf16.vlgmr.msra.gmra.mrb[0].mxu1 %vm182_vm2, %v1630_v40 }
 0x2d1   :  { %1255 = vmatprep.mubr.msk.bf16.mxu1 %vm1518_vm1, %v1517_v15 }
 0x332   :  { %v278_v53 = vpop.permute.xlu0 %277  ;;  %v230_v54 = vpop.permute.xlu1 %229 }
 0x333   :  { %v283_v55 = vsel %vm182_vm2, %v278_v53, 0  ;;  %v235_v56 = vsel %vm182_vm2, %v230_v54, 0 }
 0x334   :  { %1248 = vmatpush3.bf16.xpose.msra.mxu0 %v235_v56  ;;  %1254 = vmatpush3.bf16.xpose.msra.mxu1 %v283_v55 }
 0x335   :  { %1259 = vmatprep.subr.bf16.mxu0 %v1517_v15  ;;  %1265 = vmatprep.subr.bf16.mxu1 %v1517_v15 }
 0x336   :  { %v374_v57 = vpop.permute.xlu0 %373  ;;  %v326_v58 = vpop.permute.xlu1 %325 }
 0x337   :  { %v379_v59 = vsel %vm182_vm2, %v374_v57, 0  ;;  %v331_v60 = vsel %vm182_vm2, %v326_v58, 0 }
 0x33a   :  { %v470_v61 = vpop.permute.xlu0 %469  ;;  %v422_v62 = vpop.permute.xlu1 %421 }
 0x33b   :  { %1250 = vmatmul.mubr.msk.bf16.vlgmr.msra.gmra.mrb[4].mxu0 %vm182_vm2, %v1643_v46  ;;  %1256 = vmatmul.mubr.msk.bf16.vlgmr.msra.gmra.mrb[4].mxu1 %vm182_vm2, %v1641_v45  ;;  %v475_v63 = vsel %vm182_vm2, %v470_v61, 0  ;;  %v427_v2 = vsel %vm182_vm2, %v422_v62, 0 }
 0x33c   :  { %1260 = vmatpush3.bf16.xpose.msra.mxu0 %v331_v60  ;;  %1266 = vmatpush3.bf16.xpose.msra.mxu1 %v379_v59 }
 0x33d   :  { %1261 = vmatprep.mubr.msk.bf16.mxu0 %vm1518_vm1, %v1517_v15  ;;  %1267 = vmatprep.mubr.msk.bf16.mxu1 %vm1518_vm1, %v1517_v15 }
 0x33e   :  { %1271 = vmatprep.subr.bf16.mxu0 %v1517_v15  ;;  %1277 = vmatprep.subr.bf16.mxu1 %v1517_v15  ;;  %v518_v3 = vpop.permute.xlu1 %517 }
 0x33f   :  { %v523_v4 = vsel %vm182_vm2, %v518_v3, 0 }
 0x343   :  { %1262 = vmatmul.mubr.msk.bf16.vlgmr.msra.gmra.mrb[8].mxu0 %vm182_vm2, %v1647_v47  ;;  %1268 = vmatmul.mubr.msk.bf16.vlgmr.msra.gmra.mrb[8].mxu1 %vm182_vm2, %v1634_v44 }
 0x344   :  { %1272 = vmatpush3.bf16.xpose.msra.mxu0 %v427_v2  ;;  %1278 = vmatpush3.bf16.xpose.msra.mxu1 %v475_v63 }
 0x345   :  { %1273 = vmatprep.mubr.msk.bf16.mxu0 %vm1518_vm1, %v1517_v15  ;;  %1279 = vmatprep.mubr.msk.bf16.mxu1 %vm1518_vm1, %v1517_v15 }
 0x346   :  { %1283 = vmatprep.subr.bf16.mxu0 %v1517_v15  ;;  %1289 = vmatprep.subr.bf16.mxu1 %v1517_v15 }
 0x34b   :  { %1274 = vmatmul.mubr.msk.bf16.vlgmr.msra.gmra.mrb[12].mxu0 %vm182_vm2, %v1653_v50  ;;  %1280 = vmatmul.mubr.msk.bf16.vlgmr.msra.gmra.mrb[12].mxu1 %vm182_vm2, %v1649_v48 }
 0x34c   :  { %1284 = vmatpush3.bf16.xpose.msra.mxu0 %v523_v4  ;;  %1285 = vmatprep.mubr.msk.bf16.mxu0 %vm1518_vm1, %v1517_v15 }
 0x34d   :  { %1295 = vmatprep.subr.bf16.mxu0 %v1517_v15  ;;  %1291 = vmatprep.mubr.msk.bf16.mxu1 %vm1518_vm1, %v1517_v15 }
 0x353   :  { %1286 = vmatmul.mubr.msk.bf16.vlgmr.msra.gmra.mrb[16].mxu0 %vm182_vm2, %v1659_v52 }
 0x354   :  { %1297 = vmatprep.mubr.msk.bf16.mxu0 %vm1518_vm1, %v1517_v15 }
 0x3a3   :  { %v223_v5 = vpop.f32.mrb[0].mxu1 }
 0x3a4   :  { %v565_v6 = vmul.f32 0.35355338, %v223_v5  ;;  %v1245_v7 = vpop.f32.mrb[1].mxu1 }
 0x3a5   :  { %v226_v8 = vpop.f32.mrb[2].mxu1 }
 0x3a6   :  { %v1246_v9 = vpop.f32.mrb[3].mxu1  ;;  %v573_v10 = vsel %vm182_vm2, %v565_v6, -inf }
 0x3a7   :  { %574 = vmax.xlane.f32.xlu0 %v573_v10 }
 0x40e   :  { %v271_v11 = vpop.f32.mrb[4].mxu0  ;;  %v319_v12 = vpop.f32.mrb[4].mxu1 }
 0x40f   :  { %v1709_v13 = vmul.f32 0.35355338, %v271_v11  ;;  %v567_v14 = vmul.f32 0.35355338, %v319_v12  ;;  %v1251_v16 = vpop.f32.mrb[5].mxu0  ;;  %v1257_v17 = vpop.f32.mrb[5].mxu1 }
 0x410   :  { %v274_v18 = vpop.f32.mrb[6].mxu0  ;;  %v322_v19 = vpop.f32.mrb[6].mxu1 }
 0x411   :  { %v1252_v20 = vpop.f32.mrb[7].mxu0  ;;  %v1258_v21 = vpop.f32.mrb[7].mxu1  ;;  %v579_v22 = vsel %vm182_vm2, %v567_v14, -inf  ;;  %v576_v23 = vsel %vm182_vm2, %v1709_v13, -inf }
 0x412   :  { %580 = vmax.xlane.f32.xlu0 %v579_v22  ;;  %577 = vmax.xlane.f32.xlu1 %v576_v23 }
 0x416   :  { %v367_v25 = vpop.f32.mrb[8].mxu0  ;;  %v415_v27 = vpop.f32.mrb[8].mxu1 }
 0x417   :  { %v1714_v28 = vmul.f32 0.35355338, %v367_v25  ;;  %v1263_v29 = vpop.f32.mrb[9].mxu0  ;;  %v1269_v30 = vpop.f32.mrb[9].mxu1  ;;  %v1716_v33 = vmul.f32 0.35355338, %v415_v27 }
 0x418   :  { %v370_v31 = vpop.f32.mrb[10].mxu0  ;;  %v418_v32 = vpop.f32.mrb[10].mxu1 }
 0x419   :  { %v1264_v34 = vpop.f32.mrb[11].mxu0  ;;  %v1270_v35 = vpop.f32.mrb[11].mxu1  ;;  %v582_v36 = vsel %vm182_vm2, %v1714_v28, -inf  ;;  %v585_v37 = vsel %vm182_vm2, %v1716_v33, -inf }
 0x41a   :  { %583 = vmax.xlane.f32.xlu0 %v582_v36 }
 0x41e   :  { %v511_v38 = vpop.f32.mrb[12].mxu1  ;;  %586 = vmax.xlane.f32.xlu0 %v585_v37  ;;  %v463_v39 = vpop.f32.mrb[12].mxu0 }
 0x41f   :  { %v1722_v41 = vmul.f32 0.35355338, %v511_v38  ;;  %v1724_v42 = vmul.f32 0.35355338, %v463_v39  ;;  %v1275_v43 = vpop.f32.mrb[13].mxu0  ;;  %v1281_v49 = vpop.f32.mrb[13].mxu1 }
 0x420   :  { %v466_v51 = vpop.f32.mrb[14].mxu0  ;;  %v514_v53 = vpop.f32.mrb[14].mxu1 }
 0x421   :  { %v1276_v54 = vpop.f32.mrb[15].mxu0  ;;  %v1282_v55 = vpop.f32.mrb[15].mxu1  ;;  %v591_v56 = vsel %vm182_vm2, %v1722_v41, -inf  ;;  %v588_v57 = vsel %vm182_vm2, %v1724_v42, -inf }
 0x422   :  { %592 = vmax.xlane.f32.xlu0 %v591_v56  ;;  %589 = vmax.xlane.f32.xlu1 %v588_v57 }
 0x426   :  { %v559_v58 = vpop.f32.mrb[16].mxu0 }
 0x427   :  { %v1287_v59 = vpop.f32.mrb[17].mxu0  ;;  %v1738_v4 = vmul.f32 0.35355338, %v559_v58 }
 0x428   :  { %v562_v60 = vpop.f32.mrb[18].mxu0 }
 0x429   :  { %v1288_v61 = vpop.f32.mrb[19].mxu0 }
 0x433   :  { %718 = vrot.lane.b32.xlu1 %v1643_v46, %s1511_s25  ;;  %v594_v46 = vsel %vm182_vm2, %v1738_v4, -inf }
 0x434   :  { %v575_v62 = vpop.xlane.xlu0 %574 }
 0x435   :  { %v597_v63 = vsub.f32 %v565_v6, %v575_v62 }
 0x437   :  { %766 = vrot.lane.b32.xlu1 %v1641_v45, %s1511_s25  ;;  %v605_v2 = vmul.f32 1.442695, %v597_v63 }
 0x438   :  { %669 = vrot.lane.b32.xlu0 %v1630_v40, %s1511_s25 }
 0x439   :  { %1384 = vpow2.f32 %v605_v2 }
 0x443   :  { %v1736_v3 = vpop.eup %1384 }
 0x444   :  { %v621_v5 = vsel %vm182_vm2, %v1736_v3, 0.0 }
 0x457   :  { %622 = vadd.xlane.f32.xlu0 %v621_v5 }
 0x45b   :  { %595 = vmax.xlane.f32.xlu1 %v594_v46 }
 0x46c   :  { %814 = vrot.lane.b32.xlu1 %v1647_v47, %s1511_s25 }
 0x49f   :  { %v581_v40 = vpop.xlane.xlu0 %580  ;;  %v578_v45 = vpop.xlane.xlu1 %577 }
 0x4a0   :  { %v599_v6 = vsub.f32 %v567_v14, %v581_v40  ;;  %v598_v7 = vsub.f32 %v1709_v13, %v578_v45 }
 0x4a2   :  { %v609_v8 = vmul.f32 1.442695, %v599_v6  ;;  %v607_v9 = vmul.f32 1.442695, %v598_v7 }
 0x4a4   :  { %1386 = vpow2.f32 %v609_v8 }
 0x4a5   :  { %1388 = vpow2.f32 %v607_v9 }
 0x4a7   :  { %v584_v10 = vpop.xlane.xlu0 %583 }
 0x4a8   :  { %v600_v23 = vsub.f32 %v1714_v28, %v584_v10 }
 0x4aa   :  { %v611_v29 = vmul.f32 1.442695, %v600_v23 }
 0x4ab   :  { %v587_v11 = vpop.xlane.xlu0 %586 }
 0x4ac   :  { %v601_v22 = vsub.f32 %v1716_v33, %v587_v11 }
 0x4ae   :  { %v1747_v12 = vpop.eup %1386  ;;  %v613_v25 = vmul.f32 1.442695, %v601_v22 }
 0x4af   :  { %v1749_v16 = vpop.eup %1388  ;;  %v593_v17 = vpop.xlane.xlu0 %592  ;;  %v627_v47 = vsel %vm182_vm2, %v1747_v12, 0.0 }
 0x4b0   :  { %v590_v18 = vpop.xlane.xlu1 %589  ;;  %628 = vadd.xlane.f32.xlu0 %v627_v47  ;;  %v624_v14 = vsel %vm182_vm2, %v1749_v16, 0.0  ;;  %v603_v27 = vsub.f32 %v1722_v41, %v593_v17  ;;  %1390 = vpow2.f32 %v613_v25 }
 0x4b1   :  { %625 = vadd.xlane.f32.xlu1 %v624_v14  ;;  %v602_v30 = vsub.f32 %v1724_v42, %v590_v18  ;;  %1392 = vpow2.f32 %v611_v29 }
 0x4b2   :  { %v617_v31 = vmul.f32 1.442695, %v603_v27 }
 0x4b3   :  { %v670_v13 = vpop.permute.xlu0 %669  ;;  %v615_v32 = vmul.f32 1.442695, %v602_v30 }
 0x4b4   :  { %v719_v19 = vpop.permute.xlu1 %718  ;;  %v676_v20 = vsel %vm674_vm3, %v670_v13, 0  ;;  %1394 = vpow2.f32 %v617_v31 }
 0x4b5   :  { %v724_v21 = vsel %vm674_vm3, %v719_v19, 0  ;;  %1290 = vmatpush3.bf16.msra.mxu1 %v676_v20  ;;  %1396 = vpow2.f32 %v615_v32 }
 0x4b6   :  { %1296 = vmatpush3.bf16.msra.mxu0 %v724_v21  ;;  %1301 = vmatprep.subr.bf16.mxu1 %v1517_v15 }
 0x4b7   :  { %1307 = vmatprep.subr.bf16.mxu0 %v1517_v15 }
 0x4c2   :  { %910 = vrot.lane.b32.xlu1 %v1653_v50, %s1511_s25  ;;  %v1767_v50 = vpop.eup %1390 }
 0x4c3   :  { %v1769_v34 = vpop.eup %1392  ;;  %v633_v28 = vsel %vm182_vm2, %v1767_v50, 0.0 }
 0x4c4   :  { %v1773_v35 = vpop.eup %1394  ;;  %v630_v36 = vsel %vm182_vm2, %v1769_v34, 0.0 }
 0x4c5   :  { %v1777_v37 = vpop.eup %1396  ;;  %v639_v39 = vsel %vm182_vm2, %v1773_v35, 0.0 }
 0x4c6   :  { %862 = vrot.lane.b32.xlu0 %v1634_v44, %s1511_s25  ;;  %v767_v44 = vpop.permute.xlu1 %766  ;;  %v636_v42 = vsel %vm182_vm2, %v1777_v37, 0.0 }
 0x4c7   :  { %v772_v54 = vsel %vm674_vm3, %v767_v44, 0 }
 0x4e4   :  { %v623_v33 = vpop.xlane.xlu0 %622 }
 0x4e5   :  { %1398 = vrcp.f32 %v623_v33  ;;  %634 = vadd.xlane.f32.xlu0 %v633_v28 }
 0x4e6   :  { %631 = vadd.xlane.f32.xlu1 %v630_v36 }
 0x4e8   :  { %v596_v38 = vpop.xlane.xlu1 %595 }
 0x4e9   :  { %v604_v41 = vsub.f32 %v1738_v4, %v596_v38  ;;  %640 = vadd.xlane.f32.xlu0 %v639_v39 }
 0x4ea   :  { %637 = vadd.xlane.f32.xlu1 %v636_v42 }
 0x4eb   :  { %v619_v43 = vmul.f32 1.442695, %v604_v41 }
 0x4ec   :  { %v815_v57 = vpop.permute.xlu1 %814 }
 0x4ed   :  { %1400 = vpow2.f32 %v619_v43 }
 0x4ef   :  { %v1399_v49 = vpop.eup %1398 }
 0x4f0   :  { %v653_v51 = vmul.f32 %v1399_v49, %v1736_v3  ;;  %v1378_v49 = vld [vmem:[#allocation7] sm:$0xff]  }
 0x4f2   :  { %v661_v53 = vpack.c.bf16 %v653_v51, %v653_v51 }
 0x4f4   :  { %1292 = vmatmul.mubr.msk.bf16.vlgmr.msra.gmra.mrb[16].mxu1 %vm182_vm2, %v661_v53 }
 0x4f5   :  { %1302 = vmatpush3.bf16.msra.mxu1 %v772_v54  ;;  %1303 = vmatprep.mubr.msk.bf16.mxu1 %vm1518_vm1, %v1517_v15 }
 0x4f6   :  { %1313 = vmatprep.subr.bf16.mxu1 %v1517_v15 }
 0x4f7   :  { %v1790_v55 = vpop.eup %1400 }
 0x4f8   :  { %v642_v56 = vsel %vm182_vm2, %v1790_v55, 0.0 }
 0x4f9   :  { %643 = vadd.xlane.f32.xlu1 %v642_v56 }
 0x4ff   :  { %958 = vrot.lane.b32.xlu0 %v1649_v48, %s1511_s25  ;;  %v820_v48 = vsel %vm674_vm3, %v815_v57, 0 }
 0x50a   :  { %1006 = vrot.lane.b32.xlu1 %v1659_v52, %s1511_s25  ;;  %s1523_s25 = smov 16  }
 0x53d   :  { %v629_v58 = vpop.xlane.xlu0 %628 }
 0x53e   :  { %1402 = vrcp.f32 %v629_v58  ;;  %v626_v59 = vpop.xlane.xlu1 %625 }
 0x53f   :  { %1404 = vrcp.f32 %v626_v59 }
 0x541   :  { %v863_v2 = vpop.permute.xlu0 %862 }
 0x542   :  { %v868_v5 = vsel %vm674_vm3, %v863_v2, 0  ;;  %v911_v52 = vpop.permute.xlu1 %910 }
 0x543   :  { %v916_v14 = vsel %vm674_vm3, %v911_v52, 0 }
 0x548   :  { %v1403_v60 = vpop.eup %1402 }
 0x549   :  { %v1405_v61 = vpop.eup %1404  ;;  %v655_v62 = vmul.f32 %v1403_v60, %v1747_v12 }
 0x54a   :  { %v654_v63 = vmul.f32 %v1405_v61, %v1749_v16 }
 0x54b   :  { %v663_v3 = vpack.c.bf16 %v655_v62, %v655_v62 }
 0x54c   :  { %v662_v4 = vpack.c.bf16 %v654_v63, %v654_v63 }
 0x54d   :  { %1304 = vmatmul.mubr.msk.bf16.vlgmr.msra.gmra.mrb[20].mxu1 %vm182_vm2, %v663_v3 }
 0x54e   :  { %1298 = vmatmul.mubr.msk.bf16.vlgmr.msra.gmra.mrb[20].mxu0 %vm182_vm2, %v662_v4  ;;  %1314 = vmatpush3.bf16.msra.mxu1 %v868_v5  ;;  %v1379_v5 = vld [vmem:[#allocation7 + $0x8] sm:$0xff]  }
 0x54f   :  { %1308 = vmatpush3.bf16.msra.mxu0 %v820_v48  ;;  %1309 = vmatprep.mubr.msk.bf16.mxu0 %vm1518_vm1, %v1517_v15 }
 0x550   :  { %1315 = vmatprep.mubr.msk.bf16.mxu1 %vm1518_vm1, %v1517_v15  ;;  %1319 = vmatprep.subr.bf16.mxu0 %v1517_v15 }
 0x551   :  { %1325 = vmatprep.subr.bf16.mxu1 %v1517_v15 }
 0x572   :  { %v635_v46 = vpop.xlane.xlu0 %634 }
 0x573   :  { %1406 = vrcp.f32 %v635_v46  ;;  %v632_v40 = vpop.xlane.xlu1 %631 }
 0x574   :  { %1408 = vrcp.f32 %v632_v40 }
 0x576   :  { %v641_v45 = vpop.xlane.xlu0 %640 }
 0x577   :  { %1410 = vrcp.f32 %v641_v45  ;;  %v638_v6 = vpop.xlane.xlu1 %637 }
 0x578   :  { %1412 = vrcp.f32 %v638_v6 }
 0x57a   :  { %v959_v11 = vpop.permute.xlu0 %958 }
 0x57b   :  { %v964_v47 = vsel %vm674_vm3, %v959_v11, 0 }
 0x57d   :  { %v1407_v7 = vpop.eup %1406 }
 0x57e   :  { %v1409_v8 = vpop.eup %1408  ;;  %v657_v9 = vmul.f32 %v1407_v7, %v1767_v50 }
 0x57f   :  { %v656_v10 = vmul.f32 %v1409_v8, %v1769_v34 }
 0x580   :  { %v665_v12 = vpack.c.bf16 %v657_v9, %v657_v9 }
 0x581   :  { %v1411_v16 = vpop.eup %1410  ;;  %v664_v17 = vpack.c.bf16 %v656_v10, %v656_v10 }
 0x582   :  { %v1413_v18 = vpop.eup %1412  ;;  %1316 = vmatmul.mubr.msk.bf16.vlgmr.msra.gmra.mrb[24].mxu1 %vm182_vm2, %v665_v12  ;;  %v659_v13 = vmul.f32 %v1411_v16, %v1773_v35 }
 0x583   :  { %1310 = vmatmul.mubr.msk.bf16.vlgmr.msra.gmra.mrb[24].mxu0 %vm182_vm2, %v664_v17  ;;  %1326 = vmatpush3.bf16.msra.mxu1 %v964_v47  ;;  %v658_v19 = vmul.f32 %v1413_v18, %v1777_v37 }
 0x584   :  { %1320 = vmatpush3.bf16.msra.mxu0 %v916_v14  ;;  %1321 = vmatprep.mubr.msk.bf16.mxu0 %vm1518_vm1, %v1517_v15  ;;  %v667_v21 = vpack.c.bf16 %v659_v13, %v659_v13 }
 0x585   :  { %1327 = vmatprep.mubr.msk.bf16.mxu1 %vm1518_vm1, %v1517_v15  ;;  %1331 = vmatprep.subr.bf16.mxu0 %v1517_v15  ;;  %v666_v22 = vpack.c.bf16 %v658_v19, %v658_v19 }
 0x586   :  { %v644_v20 = vpop.xlane.xlu1 %643  ;;  %1337 = vmatprep.subr.bf16.mxu1 %v1517_v15 }
 0x587   :  { %1414 = vrcp.f32 %v644_v20 }
 0x58a   :  { %1328 = vmatmul.mubr.msk.bf16.vlgmr.msra.gmra.mrb[28].mxu1 %vm182_vm2, %v667_v21  ;;  %v1007_v23 = vpop.permute.xlu1 %1006  ;;  %v1093_v21 = vsub.s32 2, %v1616_v24 }
 0x58b   :  { %1322 = vmatmul.mubr.msk.bf16.vlgmr.msra.gmra.mrb[28].mxu0 %vm182_vm2, %v666_v22  ;;  %v1012_v25 = vsel %vm674_vm3, %v1007_v23, 0  ;;  %1341 = vmatprep.mubr.msk.bf16.mxu1 %vm1518_vm1, %v1517_v15 }
 0x58c   :  { %1332 = vmatpush3.bf16.msra.mxu0 %v1012_v25  ;;  %1333 = vmatprep.mubr.msk.bf16.mxu0 %vm1518_vm1, %v1517_v15  ;;  %v1094_v22 = vrot.slane %v1622_v26, %v1093_v21 }
 0x58d   :  { %1338 = vmatpush3.bf16.msra.mxu1 %v1378_v49 }
 0x58e   :  { %1339 = vmatprep.subr.bf16.mxu1 %v1517_v15 }
 0x591   :  { %v1415_v27 = vpop.eup %1414  ;;  %1340 = vmatpush3.bf16.msra.mxu1 %v1379_v5 }
 0x592   :  { %v660_v29 = vmul.f32 %v1415_v27, %v1790_v55 }
 0x594   :  { %v668_v30 = vpack.c.bf16 %v660_v29, %v660_v29 }
 0x596   :  { %1334 = vmatmul.mubr.msk.bf16.vlgmr.msra.gmra.mrb[32].mxu0 %vm182_vm2, %v668_v30 }
 0x5c7   :  { %v712_v31 = vpop.f32.mrb[16].mxu1 }
 0x5c8   :  { %v1293_v32 = vpop.f32.mrb[17].mxu1 }
 0x5c9   :  { %v715_v50 = vpop.f32.mrb[18].mxu1 }
 0x5ca   :  { %v1294_v34 = vpop.f32.mrb[19].mxu1 }
 0x620   :  { %v808_v44 = vpop.f32.mrb[20].mxu1 }
 0x621   :  { %v760_v33 = vpop.f32.mrb[20].mxu0  ;;  %v1305_v28 = vpop.f32.mrb[21].mxu1 }
 0x622   :  { %v1299_v35 = vpop.f32.mrb[21].mxu0  ;;  %v811_v36 = vpop.f32.mrb[22].mxu1 }
 0x623   :  { %v763_v37 = vpop.f32.mrb[22].mxu0  ;;  %v1306_v38 = vpop.f32.mrb[23].mxu1 }
 0x624   :  { %v1300_v39 = vpop.f32.mrb[23].mxu0 }
 0x655   :  { %v904_v41 = vpop.f32.mrb[24].mxu1 }
 0x656   :  { %v856_v42 = vpop.f32.mrb[24].mxu0  ;;  %v1317_v43 = vpop.f32.mrb[25].mxu1 }
 0x657   :  { %v1311_v51 = vpop.f32.mrb[25].mxu0  ;;  %v907_v53 = vpop.f32.mrb[26].mxu1 }
 0x658   :  { %v859_v54 = vpop.f32.mrb[26].mxu0  ;;  %v1318_v55 = vpop.f32.mrb[27].mxu1 }
 0x659   :  { %v1312_v56 = vpop.f32.mrb[27].mxu0 }
 0x65d   :  { %v1000_v57 = vpop.f32.mrb[28].mxu1 }
 0x65e   :  { %v952_v58 = vpop.f32.mrb[28].mxu0  ;;  %v1366_v59 = vpack.i.bf16 %v1000_v57, %v808_v44  ;;  %v1329_v60 = vpop.f32.mrb[29].mxu1 }
 0x65f   :  { %v1361_v61 = vpack.i.bf16 %v952_v58, %v760_v33  ;;  %v1323_v62 = vpop.f32.mrb[29].mxu0  ;;  %v1003_v63 = vpop.f32.mrb[30].mxu1 }
 0x660   :  { %v955_v2 = vpop.f32.mrb[30].mxu0  ;;  %v1330_v3 = vpop.f32.mrb[31].mxu1  ;;  %1367 = vrot.lane.b32.xlu1 %v1366_v59, %s1523_s25 }
 0x661   :  { %1362 = vrot.lane.b32.xlu0 %v1361_v61, %s1515_s13  ;;  %v1324_v4 = vpop.f32.mrb[31].mxu0 }
 0x669   :  { %v1048_v48 = vpop.f32.mrb[32].mxu0 }
 0x66a   :  { %v1371_v52 = vpack.i.bf16 %v1048_v48, %v856_v42  ;;  %v1335_v46 = vpop.f32.mrb[33].mxu0 }
 0x66b   :  { %v1051_v15 = vpop.f32.mrb[34].mxu0 }
 0x66c   :  { %1372 = vrot.lane.b32.xlu0 %v1371_v52, %s1524_s6  ;;  %v1336_v40 = vpop.f32.mrb[35].mxu0 }
 0x6d2   :  { %v1368_v6 = vpop.permute.xlu1 %1367 }
 0x6d3   :  { %v1363_v45 = vpop.permute.xlu0 %1362  ;;  %v1370_v9 = vunpack.i.h.bf16 %v1368_v6  ;;  %v1369_v10 = vunpack.i.l.bf16 %v1368_v6 }
 0x6d4   :  { %v1365_v7 = vunpack.i.h.bf16 %v1363_v45  ;;  %v1364_v8 = vunpack.i.l.bf16 %v1363_v45 }
 0x6d6   :  { %v1079_v11 = vsel %vm182_vm2, %v904_v41, %v1365_v7  ;;  %v1078_v12 = vsel %vm182_vm2, %v712_v31, %v1364_v8 }
 0x6d7   :  { %v1081_v47 = vsel %vm1080_vm4, %v1078_v12, %v1369_v10  ;;  %v1082_v14 = vsel %vm1080_vm4, %v1079_v11, %v1370_v9 }
 0x6de   :  { %v1373_v16 = vpop.permute.xlu0 %1372 }
 0x6df   :  { %v1375_v17 = vunpack.i.h.bf16 %v1373_v16  ;;  %v1374_v18 = vunpack.i.l.bf16 %v1373_v16 }
 0x6e1   :  { %v1085_v13 = vsel %vm1083_vm5, %v1082_v14, %v1375_v17  ;;  %v1084_v19 = vsel %vm1083_vm5, %v1081_v47, %v1374_v18 }
 0x6e2   :  { %v1086_v20 = vpack.c.bf16 %v1085_v13, %v1084_v19 }
 0x6e4   :  { %1342 = vmatmul.mubr.msk.bf16.vlgmr.msra.gmra.mrb[32].mxu1 %vm63_vm0, %v1086_v20 }
 0x7b7   :  { %v1144_v23 = vpop.f32.mrb[32].mxu1 }
 0x7b8   :  { %v1145_v25 = vadd.f32 %v1144_v23, %v1094_v22  ;;  %v1343_v27 = vpop.f32.mrb[33].mxu1 }
 0x7b9   :  { %v1147_v29 = vpop.f32.mrb[34].mxu1 }
 0x7ba   :  { %v1151_v30 = vadd.f32 %v1145_v25, %v1596_v0  ;;  %v1148_v31 = vadd.f32 %v1147_v29, %v1094_v22  ;;  %v1344_v32 = vpop.f32.mrb[35].mxu1 }
 0x7bc   :  { %1153 = vst.msk [vmem:[#allocation8] sm:$0xff] %vm63_vm0, %v1151_v30  ;;  %v1152_v50 = vadd.f32 %v1148_v31, %v1598_v1 }
 0x7be   :  { %1154 = vst.msk [vmem:[#allocation8 + $0x8] sm:$0xff] %vm63_vm0, %v1152_v50 }
 0x7bf   :  { %1493 = shalt.err (!%p1490_p0)
}
 0x7c0   :  { %s1494_s12 = scalar_lea.hbm %s1863_s4, 256 }
 0x7c1   :  { %p1495_p1 = scmp.ne.s32.totalorder %s1863_s4, %s1494_s12  ;;  %p1498_p2 = scmp.lt.u32.totalorder %s1494_s12, %s1863_s4 }
 0x7c3   :  { %p1500_p3 = pnand %p1498_p2, %p1495_p1 }
 0x7c5   :  { %1503 = shalt.err (!%p1500_p3)
}
 0x7c6   :  { %1166 = dma.vmem_to_hbm [thread:$0]  %s1161_s8, 256, %s1863_s4, [#allocation4], %s1514_s2, %s1514_s2, %s1515_s13  }
 0x7c7   :  { %1508 = dma.done.wait [#allocation4], 256  }
 0x7c8   :  { %1509 = vsyncadd [#allocation4], 4294967040 }
 0x7c9   :  { %1170 = vsyncpa [#allocation3], 1 }
 0x7ca   :  { %1171 = vsyncpa [#allocation6], 1 }
 0x7cb   :  { %1172 = vsyncpa [#allocation4], 1 }

</bundles_post_ra>
